<compile_context>
chip_gen: v7x
topology: tpu7x:2x2x1
jax: 0.10.0
libtpu: 0.0.40
codegen_flags: <defaults>
</compile_context>

<pallas_src>
import jax
import jax.numpy as jnp
from jax.experimental import pallas as pl
from jax.experimental.pallas import tpu as pltpu

EPS = 1e-5
DEFAULT_TILE_B = 4096   # rows per grid step; primary tuning knob (sweep 2048-8192)


def phishing_net_kernel(
    x_ref,
    w1_ref, b1_ref,
    w2_ref, b2_ref,
    w3_ref, b3_ref,
    w4_ref, b4_ref,
    out_ref,
):
    # In-kernel bf16 cast of the streamed x tile (saves a wrapper HBM pass).
    xb = x_ref[...].astype(jnp.bfloat16)

    # Layer 1: (BN + bias folded) linear -> ReLU.  bf16 operands, f32 accumulate.
    h = jnp.dot(xb, w1_ref[...], preferred_element_type=jnp.float32)
    h = jnp.maximum(h + b1_ref[...], 0.0).astype(jnp.bfloat16)

    # Layer 2: (BN + bias folded) linear -> ReLU.
    h = jnp.dot(h, w2_ref[...], preferred_element_type=jnp.float32)
    h = jnp.maximum(h + b2_ref[...], 0.0).astype(jnp.bfloat16)

    # Layer 3: (BN + bias folded) linear -> ReLU (kept f32 for the final dot).
    h = jnp.dot(h, w3_ref[...], preferred_element_type=jnp.float32)
    h = jnp.maximum(h + b3_ref[...], 0.0)

    # Layer 4: w4_row (1, 32) contracted with h (tb, 32) on the feature dim
    # -> (1, tb) logits with the batch in lanes (unmasked lane-dense stores).
    logits = jax.lax.dot_general(
        w4_ref[...], h,
        dimension_numbers=(((1,), (1,)), ((), ())),
        preferred_element_type=jnp.float32,
    )
    out_ref[...] = (logits + b4_ref[...]).astype(out_ref.dtype)


def fold_params(raw_params):
    """One-time offline transform: fold eval-mode BatchNorm + bias into weights.

    raw_params layout (matching PhishingNet.__init__):
      [W1, b1, g1, be1, m1, v1,  W2, b2, g2, be2, m2, v2,
       W3, b3, g3, be3, m3, v3,  W4, b4]
    W_k is (in, out); all per-feature vectors are (1, out).
    Returns [W1',b1', W2',b2', W3',b3', W4_row, b4]:
      W1-3 bf16 (in,out); b1-3 f32 (1,out); W4_row f32 (1,32); b4 f32 (1,1).
    """
    folded = []
    idx = 0
    for _ in range(3):
        w, b, gamma, beta, mean, var = raw_params[idx:idx + 6]
        idx += 6
        scale = gamma * jax.lax.rsqrt(var + EPS)               # (1, out)
        folded.append((w * scale).astype(jnp.bfloat16))        # (in, out)
        folded.append(((b - mean) * scale + beta).astype(jnp.float32))  # (1, out)
    w4, b4 = raw_params[idx], raw_params[idx + 1]
    folded.append(jnp.transpose(w4).astype(jnp.float32))       # (1, 32) row
    folded.append(jnp.reshape(b4, (1, 1)).astype(jnp.float32))
    return folded


def _round_up(x, m):
    return (x + m - 1) // m * m


def _choose_tile(batch, tile_b):
    """Rows per grid step: big tiles for throughput, >=2 tiles for v7x megacore."""
    if batch > tile_b:
        return tile_b
    if batch >= 1024:
        # Split into two tiles so v7x's two TensorCores both get work.
        return _round_up(pl.cdiv(batch, 2), 128)
    return max(_round_up(batch, 8), 8)


def phishing_net_forward(x, folded_params, *, tile_b=DEFAULT_TILE_B):
    """Forward pass on x of shape (B, input_dim); returns (B, 1) f32 logits."""
    B, D = x.shape
    tb = _choose_tile(B, tile_b)
    num_tiles = pl.cdiv(B, tb)

    def resident(p):
        # Same block every grid step -> weights/biases stay VMEM-resident.
        return pl.BlockSpec(p.shape, lambda i: (0, 0))

    in_specs = [pl.BlockSpec((tb, D), lambda i: (i, 0))]        # pipelined x tile
    in_specs += [resident(p) for p in folded_params]            # resident params
    # TODO(synk): on v5e, if the x-tile DMA is exposed at tb>=4096, bump the x
    #             BlockSpec to pipeline_mode=pl.Buffered(3) after verifying.

    out = pl.pallas_call(
        phishing_net_kernel,
        out_shape=jax.ShapeDtypeStruct((num_tiles, tb), jnp.float32),
        grid=(num_tiles,),
        in_specs=in_specs,
        out_specs=pl.BlockSpec((1, tb), lambda i: (i, 0)),      # lane-dense rows
        compiler_params=pltpu.CompilerParams(
            dimension_semantics=("parallel",)),   # batch tiles across v7x's 2 TCs
    )(x, *folded_params)

    # Lane-dense (num_tiles, tb) slab -> logical (B, 1); ragged-tail rows from a
    # partial last x block are undefined and sliced off here.
    return out.reshape(num_tiles * tb, 1)[:B]


def init_params(input_dim, key):
    """Deterministic synthetic raw parameters matching PhishingNet.__init__ shapes."""
    dims = [(input_dim, 128), (128, 64), (64, 32), (32, 1)]
    keys = jax.random.split(key, 16)
    params = []
    ki = 0
    for li, (din, dout) in enumerate(dims):
        w = jax.random.normal(keys[ki], (din, dout), jnp.float32) * 0.05; ki += 1
        b = jax.random.normal(keys[ki], (1, dout), jnp.float32) * 0.01; ki += 1
        params.extend([w, b])
        if li < 3:  # BatchNorm1d follows fc1, fc2, fc3
            gamma = 1.0 + 0.1 * jax.random.normal(keys[ki], (1, dout), jnp.float32); ki += 1
            beta = 0.1 * jax.random.normal(keys[ki], (1, dout), jnp.float32); ki += 1
            mean = 0.05 * jnp.arange(dout, dtype=jnp.float32).reshape(1, dout) / dout
            var = 1.0 + 0.1 * jnp.cos(jnp.arange(dout, dtype=jnp.float32)).reshape(1, dout) ** 2
            params.extend([gamma, beta, mean, var])
    return params


def reference_forward(x, raw_params):
    """Pure-JAX f32 eval-mode reference (unfused BN) for correctness checking."""
    h = x
    idx = 0
    for layer in range(4):
        w, b = raw_params[idx], raw_params[idx + 1]
        h = h @ w + b
        if layer < 3:
            gamma, beta, mean, var = raw_params[idx + 2:idx + 6]
            h = gamma * (h - mean) * jax.lax.rsqrt(var + EPS) + beta
            h = jnp.maximum(h, 0.0)
            idx += 6
        else:
            idx += 2
    return h


if __name__ == "__main__":
    INPUT_DIM = 32

    key = jax.random.PRNGKey(0)
    k_x, k_p, k_x2 = jax.random.split(key, 3)

    raw_params = init_params(INPUT_DIM, k_p)
    params = fold_params(raw_params)   # one-time offline constant transform

    # Small single-tile case.
    x = jax.random.normal(k_x, (8, INPUT_DIM), jnp.float32)
    out = phishing_net_forward(x, params)
    jax.block_until_ready(out)
    assert out.shape == (8, 1)
    assert out.dtype == jnp.float32
    assert bool(jnp.all(jnp.isfinite(out)))
    ref = reference_forward(x, raw_params)
    assert bool(jnp.allclose(out, ref, atol=5e-2, rtol=5e-2)), (
        f"max abs diff {float(jnp.max(jnp.abs(out - ref)))}")

    # Ragged multi-tile case: exercises the partial last x block and the
    # lane-dense (1, tb) output path across several grid steps.
    x2 = jax.random.normal(k_x2, (300, INPUT_DIM), jnp.float32)
    out2 = phishing_net_forward(x2, params, tile_b=128)
    jax.block_until_ready(out2)
    assert out2.shape == (300, 1)
    assert bool(jnp.all(jnp.isfinite(out2)))
    ref2 = reference_forward(x2, raw_params)
    assert bool(jnp.allclose(out2, ref2, atol=5e-2, rtol=5e-2)), (
        f"max abs diff {float(jnp.max(jnp.abs(out2 - ref2)))}")

    print("KERNEL_OK")
</pallas_src>

<mosaic_0001>
module attributes {stable_mosaic.version = 11 : i64} {
  func.func @phishing_net_kernel(%arg0: i32, %arg1: memref<8x32xf32, #tpu.memory_space<vmem>>, %arg2: memref<32x128xbf16, #tpu.memory_space<vmem>>, %arg3: memref<1x128xf32, #tpu.memory_space<vmem>>, %arg4: memref<128x64xbf16, #tpu.memory_space<vmem>>, %arg5: memref<1x64xf32, #tpu.memory_space<vmem>>, %arg6: memref<64x32xbf16, #tpu.memory_space<vmem>>, %arg7: memref<1x32xf32, #tpu.memory_space<vmem>>, %arg8: memref<1x32xf32, #tpu.memory_space<vmem>>, %arg9: memref<1x1xf32, #tpu.memory_space<vmem>>, %arg10: memref<1x8xf32, #tpu.memory_space<vmem>>) attributes {dimension_semantics = [#tpu.dimension_semantics<parallel>], iteration_bounds = array<i64: 1>, scalar_prefetch = 0 : i64, scratch_operands = 0 : i64, tpu.core_type = #tpu.core_type<tc>, window_params = [{transform_indices = @transform_0, window_bounds = array<i64: 8, 32>}, {pipeline_mode = #tpu.pipeline_mode<synchronous>, transform_indices = @transform_1, window_bounds = array<i64: 32, 128>}, {pipeline_mode = #tpu.pipeline_mode<synchronous>, transform_indices = @transform_2, window_bounds = array<i64: 1, 128>}, {pipeline_mode = #tpu.pipeline_mode<synchronous>, transform_indices = @transform_3, window_bounds = array<i64: 128, 64>}, {pipeline_mode = #tpu.pipeline_mode<synchronous>, transform_indices = @transform_4, window_bounds = array<i64: 1, 64>}, {pipeline_mode = #tpu.pipeline_mode<synchronous>, transform_indices = @transform_5, window_bounds = array<i64: 64, 32>}, {pipeline_mode = #tpu.pipeline_mode<synchronous>, transform_indices = @transform_6, window_bounds = array<i64: 1, 32>}, {pipeline_mode = #tpu.pipeline_mode<synchronous>, transform_indices = @transform_7, window_bounds = array<i64: 1, 32>}, {pipeline_mode = #tpu.pipeline_mode<synchronous>, transform_indices = @transform_8, window_bounds = array<i64: 1, 1>}, {transform_indices = @transform_9, window_bounds = array<i64: 1, 8>}]} {
    %c0 = arith.constant 0 : index
    %c0_0 = arith.constant 0 : index
    %0 = vector.load %arg1[%c0, %c0_0] : memref<8x32xf32, #tpu.memory_space<vmem>>, vector<8x32xf32>
    %1 = arith.truncf %0 : vector<8x32xf32> to vector<8x32xbf16>
    %c0_1 = arith.constant 0 : index
    %c0_2 = arith.constant 0 : index
    %2 = vector.load %arg2[%c0_1, %c0_2] : memref<32x128xbf16, #tpu.memory_space<vmem>>, vector<32x128xbf16>
    %cst = arith.constant dense<0.000000e+00> : vector<8x128xf32>
    %3 = tpu.matmul %1, %2, %cst {dimension_numbers = #tpu.dot_dimension_numbers<[1], [0], [0], [1], [0, 0, 1, 1], [], []>} : vector<8x32xbf16>, vector<32x128xbf16>, vector<8x128xf32> -> vector<8x128xf32>
    %c0_3 = arith.constant 0 : index
    %c0_4 = arith.constant 0 : index
    %4 = vector.load %arg3[%c0_3, %c0_4] : memref<1x128xf32, #tpu.memory_space<vmem>>, vector<1x128xf32>
    %5 = vector.broadcast %4 : vector<1x128xf32> to vector<8x128xf32>
    %6 = arith.addf %3, %5 : vector<8x128xf32>
    %cst_5 = arith.constant 0.000000e+00 : f32
    %7 = vector.broadcast %cst_5 : f32 to vector<8x128xf32>
    %8 = arith.maximumf %6, %7 : vector<8x128xf32>
    %9 = arith.truncf %8 : vector<8x128xf32> to vector<8x128xbf16>
    %c0_6 = arith.constant 0 : index
    %c0_7 = arith.constant 0 : index
    %10 = vector.load %arg4[%c0_6, %c0_7] : memref<128x64xbf16, #tpu.memory_space<vmem>>, vector<128x64xbf16>
    %cst_8 = arith.constant dense<0.000000e+00> : vector<8x64xf32>
    %11 = tpu.matmul %9, %10, %cst_8 {dimension_numbers = #tpu.dot_dimension_numbers<[1], [0], [0], [1], [0, 0, 1, 1], [], []>} : vector<8x128xbf16>, vector<128x64xbf16>, vector<8x64xf32> -> vector<8x64xf32>
    %c0_9 = arith.constant 0 : index
    %c0_10 = arith.constant 0 : index
    %12 = vector.load %arg5[%c0_9, %c0_10] : memref<1x64xf32, #tpu.memory_space<vmem>>, vector<1x64xf32>
    %13 = vector.broadcast %12 : vector<1x64xf32> to vector<8x64xf32>
    %14 = arith.addf %11, %13 : vector<8x64xf32>
    %cst_11 = arith.constant 0.000000e+00 : f32
    %15 = vector.broadcast %cst_11 : f32 to vector<8x64xf32>
    %16 = arith.maximumf %14, %15 : vector<8x64xf32>
    %17 = arith.truncf %16 : vector<8x64xf32> to vector<8x64xbf16>
    %c0_12 = arith.constant 0 : index
    %c0_13 = arith.constant 0 : index
    %18 = vector.load %arg6[%c0_12, %c0_13] : memref<64x32xbf16, #tpu.memory_space<vmem>>, vector<64x32xbf16>
    %cst_14 = arith.constant dense<0.000000e+00> : vector<8x32xf32>
    %19 = tpu.matmul %17, %18, %cst_14 {dimension_numbers = #tpu.dot_dimension_numbers<[1], [0], [0], [1], [0, 0, 1, 1], [], []>} : vector<8x64xbf16>, vector<64x32xbf16>, vector<8x32xf32> -> vector<8x32xf32>
    %c0_15 = arith.constant 0 : index
    %c0_16 = arith.constant 0 : index
    %20 = vector.load %arg7[%c0_15, %c0_16] : memref<1x32xf32, #tpu.memory_space<vmem>>, vector<1x32xf32>
    %21 = vector.broadcast %20 : vector<1x32xf32> to vector<8x32xf32>
    %22 = arith.addf %19, %21 : vector<8x32xf32>
    %cst_17 = arith.constant 0.000000e+00 : f32
    %23 = vector.broadcast %cst_17 : f32 to vector<8x32xf32>
    %24 = arith.maximumf %22, %23 : vector<8x32xf32>
    %c0_18 = arith.constant 0 : index
    %c0_19 = arith.constant 0 : index
    %25 = vector.load %arg8[%c0_18, %c0_19] : memref<1x32xf32, #tpu.memory_space<vmem>>, vector<1x32xf32>
    %cst_20 = arith.constant dense<0.000000e+00> : vector<1x8xf32>
    %26 = tpu.matmul %25, %24, %cst_20 {dimension_numbers = #tpu.dot_dimension_numbers<[1], [1], [0], [0], [0, 0, 1, 0], [], []>} : vector<1x32xf32>, vector<8x32xf32>, vector<1x8xf32> -> vector<1x8xf32>
    %c0_21 = arith.constant 0 : index
    %c0_22 = arith.constant 0 : index
    %27 = vector.load %arg9[%c0_21, %c0_22] : memref<1x1xf32, #tpu.memory_space<vmem>>, vector<1x1xf32>
    %28 = vector.broadcast %27 : vector<1x1xf32> to vector<1x8xf32>
    %29 = arith.addf %26, %28 : vector<1x8xf32>
    %c0_23 = arith.constant 0 : index
    %c0_24 = arith.constant 0 : index
    %30 = vector.load %arg10[%c0_23, %c0_24] : memref<1x8xf32, #tpu.memory_space<vmem>>, vector<1x8xf32>
    tpu.vector_store %arg10[%c0_23, %c0_24], %29 {strides = array<i32>} : memref<1x8xf32, #tpu.memory_space<vmem>>, vector<1x8xf32>,
    return
  }
  func.func @transform_0(%arg0: i32) -> (i32, i32) {
    %c0_i32 = arith.constant 0 : i32
    %c0_i32_0 = arith.constant 0 : i32
    return %arg0, %c0_i32 : i32, i32
  }
  func.func @transform_1(%arg0: i32) -> (i32, i32) {
    %c0_i32 = arith.constant 0 : i32
    %c0_i32_0 = arith.constant 0 : i32
    %c0_i32_1 = arith.constant 0 : i32
    return %c0_i32, %c0_i32_0 : i32, i32
  }
  func.func @transform_2(%arg0: i32) -> (i32, i32) {
    %c0_i32 = arith.constant 0 : i32
    %c0_i32_0 = arith.constant 0 : i32
    %c0_i32_1 = arith.constant 0 : i32
    return %c0_i32, %c0_i32_0 : i32, i32
  }
  func.func @transform_3(%arg0: i32) -> (i32, i32) {
    %c0_i32 = arith.constant 0 : i32
    %c0_i32_0 = arith.constant 0 : i32
    %c0_i32_1 = arith.constant 0 : i32
    return %c0_i32, %c0_i32_0 : i32, i32
  }
  func.func @transform_4(%arg0: i32) -> (i32, i32) {
    %c0_i32 = arith.constant 0 : i32
    %c0_i32_0 = arith.constant 0 : i32
    %c0_i32_1 = arith.constant 0 : i32
    return %c0_i32, %c0_i32_0 : i32, i32
  }
  func.func @transform_5(%arg0: i32) -> (i32, i32) {
    %c0_i32 = arith.constant 0 : i32
    %c0_i32_0 = arith.constant 0 : i32
    %c0_i32_1 = arith.constant 0 : i32
    return %c0_i32, %c0_i32_0 : i32, i32
  }
  func.func @transform_6(%arg0: i32) -> (i32, i32) {
    %c0_i32 = arith.constant 0 : i32
    %c0_i32_0 = arith.constant 0 : i32
    %c0_i32_1 = arith.constant 0 : i32
    return %c0_i32, %c0_i32_0 : i32, i32
  }
  func.func @transform_7(%arg0: i32) -> (i32, i32) {
    %c0_i32 = arith.constant 0 : i32
    %c0_i32_0 = arith.constant 0 : i32
    %c0_i32_1 = arith.constant 0 : i32
    return %c0_i32, %c0_i32_0 : i32, i32
  }
  func.func @transform_8(%arg0: i32) -> (i32, i32) {
    %c0_i32 = arith.constant 0 : i32
    %c0_i32_0 = arith.constant 0 : i32
    %c0_i32_1 = arith.constant 0 : i32
    return %c0_i32, %c0_i32_0 : i32, i32
  }
  func.func @transform_9(%arg0: i32) -> (i32, i32) {
    %c0_i32 = arith.constant 0 : i32
    %c0_i32_0 = arith.constant 0 : i32
    return %arg0, %c0_i32 : i32, i32
  }
}

</mosaic_0001>

<bundles_post_ra>
// kernel: tpu_custom_call.1
= control target key start
LH: loop header
LB: loop body
LE: loop exit
PB: predicated region body
PF: predicated region fallthrough
CT: control target
= control target key end

     0   :  { %s687_s0 = inlined_call_operand.vmem [shape: f32[8,32], index: 0, kind: input, shape index: {}]   ;;  %s688_s1 = inlined_call_operand.vmem [shape: bf16[32,128], index: 1, kind: input, shape index: {}]   ;;  %s689_s2 = inlined_call_operand.vmem [shape: f32[1,128], index: 2, kind: input, shape index: {}]   ;;  %s690_s3 = inlined_call_operand.vmem [shape: bf16[128,64], index: 3, kind: input, shape index: {}]   ;;  %s691_s4 = inlined_call_operand.vmem [shape: f32[1,64], index: 4, kind: input, shape index: {}]   ;;  %s692_s5 = inlined_call_operand.vmem [shape: bf16[64,32], index: 5, kind: input, shape index: {}]   ;;  %s693_s6 = inlined_call_operand.vmem [shape: f32[1,32], index: 6, kind: input, shape index: {}]   ;;  %s694_s7 = inlined_call_operand.vmem [shape: f32[1,32], index: 7, kind: input, shape index: {}]   ;;  %s695_s8 = inlined_call_operand.<no memory space> [shape: f32[1,1], index: 8, kind: input, shape index: {}]   ;;  %s696_s9 = inlined_call_operand.hbm [shape: f32[1,8], index: 9, kind: output, shape index: {}]  }
   0x1   :  { %v14_v0 = vstv %s695_s8 }
   0x2   :  { %15 = vst [vmem:[#allocation2] sm:$0x1] %v14_v0 }
   0x3   :  { %v497_v1 = vld [vmem:[%s688_s1] sm:$0xff]   ;;  %v535_v2 = vmov 0.0   ;;  %v498_v3 = vld [vmem:[%s688_s1 + $0x8] sm:$0xff]   ;;  %vm536_vm0 = vmmov 0   ;;  %vm61_vm1 = vcmask 261120   ;;  %v501_v8 = vld [vmem:[%s690_s3 + $0x10] sm:$0xff]  }
   0x4   :  { %447 = vmatprep.subr.bf16.mxu0 %v535_v2  ;;  %455 = vmatprep.subr.bf16.mxu1 %v535_v2  ;;  %v36_v4 = vld [vmem:[%s687_s0] sm:$0xff]  ;;  %v500_v7 = vld [vmem:[%s690_s3 + $0x8] sm:$0xff]  }
   0x5   :  { %448 = vmatpush3.bf16.msra.mxu0 %v497_v1  ;;  %451 = vmatprep.mubr.msk.bf16.mxu0 %vm536_vm0, %v535_v2  ;;  %v499_v5 = vld [vmem:[%s690_s3] sm:$0xff]   ;;  %v37_v6 = vpack.c.bf16 %v36_v4, %v36_v4 }
   0x6   :  { %449 = vmatprep.subr.bf16.mxu0 %v535_v2  ;;  %471 = vmatprep.mubr.msk.bf16.mxu1 %vm536_vm0, %v535_v2 }
   0x7   :  { %456 = vmatpush3.bf16.msra.mxu1 %v499_v5 }
   0x8   :  { %457 = vmatprep.subr.bf16.mxu1 %v535_v2 }
   0x9   :  { %450 = vmatpush3.bf16.msra.mxu0 %v498_v3 }
   0xa   :  { %475 = vmatprep.subr.bf16.mxu0 %v535_v2 }
   0xb   :  { %458 = vmatpush3.bf16.msra.mxu1 %v500_v7 }
   0xc   :  { %452 = vmatmul.mubr.msk.bf16.vlgmr.msra.gmra.mrb[0].mxu0 %vm61_vm1, %v37_v6  ;;  %459 = vmatprep.subr.bf16.mxu1 %v535_v2 }
   0xd   :  { %483 = vmatprep.mubr.msk.bf16.mxu0 %vm536_vm0, %v535_v2 }
   0xe   :  { %16 = vsyncpa [#allocation4], 0  ;;  %v502_v9 = vld [vmem:[%s690_s3 + $0x18] sm:$0xff]   ;;  %v503_v10 = vld [vmem:[%s690_s3 + $0x20] sm:$0xff]   ;;  %vm259_vm2 = vcmask 523264   ;;  %v537_v35 = vmov 0   ;;  %v311_v44 = vlaneseq }
   0xf   :  { %460 = vmatpush3.bf16.msra.mxu1 %v501_v8  ;;  %v504_v11 = vld [vmem:[%s690_s3 + $0x28] sm:$0xff]   ;;  %v505_v12 = vld [vmem:[%s690_s3 + $0x30] sm:$0xff]   ;;  %v506_v13 = vld [vmem:[%s690_s3 + $0x38] sm:$0xff]   ;;  %496 = vset.pattern.permute.xlu0 %v537_v35  ;;  %vm391_vm3 = vcmask 57344  }
  0x10   :  { %461 = vmatprep.subr.bf16.mxu1 %v535_v2  ;;  %v507_v14 = vld [vmem:[%s692_s5] sm:$0xff]   ;;  %v508_v15 = vld [vmem:[%s692_s5 + $0x8] sm:$0xff]   ;;  %v509_v24 = vld [vmem:[%s692_s5 + $0x10] sm:$0xff]   ;;  %v312_v45 = vshrl.u32 %v311_v44, 7 }
  0x11   :  { %476 = vmatpush3.bf16.msra.mxu0 %v507_v14  ;;  %v407_v16 = vld [vmem:[%s689_s2] ss:$0 sm:$0xff]  ;;  %v510_v25 = vld [vmem:[%s692_s5 + $0x18] sm:$0xff]  }
  0x12   :  { %477 = vmatprep.subr.bf16.mxu0 %v535_v2  ;;  %v411_v26 = vld [vmem:[%s691_s4] ss:$0 sm:$0xff]  ;;  %v313_v46 = vsub.s32 0, %v312_v45 }
  0x13   :  { %462 = vmatpush3.bf16.msra.mxu1 %v502_v9  ;;  %v305_v34 = vld [vmem:[#allocation2] sm:$0x1] }
  0x14   :  { %463 = vmatprep.subr.bf16.mxu1 %v535_v2  ;;  %308 = vperm.xlu0 %496, %v305_v34   ;;  %v420_v36 = vld [vmem:[%s693_s6] ss:$0 sm:$0xff]  ;;  %s538_s6 = smov [#allocation3]  }
  0x15   :  { %478 = vmatpush3.bf16.msra.mxu0 %v508_v15  ;;  %v304_v43 = vld [vmem:[%s694_s7] sm:$0x1]  ;;  %s399_s0 = sshll.u32 %s538_s6, 4  ;;  %s400_s0 = int_to_ptr.vmem [resolvable:$true] %s399_s0 }
  0x16   :  { %479 = vmatprep.subr.bf16.mxu0 %v535_v2  ;;  %s511_s19 = scalar_lea.vmem %s400_s0, 16  ;;  %s515_s20 = scalar_lea.vmem %s400_s0, 32 }
  0x17   :  { %464 = vmatpush3.bf16.msra.mxu1 %v503_v10  ;;  %p512_p0 = scmp.ne.s32.totalorder %s400_s0, %s511_s19  ;;  %p516_p1 = scmp.lt.s32.totalorder %s400_s0, %s400_s0 }
  0x18   :  { %465 = vmatprep.subr.bf16.mxu1 %v535_v2  ;;  %p517_p2 = scmp.lt.s32.totalorder %s515_s20, %s511_s19 }
  0x19   :  { %480 = vmatpush3.bf16.msra.mxu0 %v509_v24 }
  0x1a   :  { %481 = vmatprep.subr.bf16.mxu0 %v535_v2  ;;  %p518_p3 = por %p517_p2, %p516_p1 }
  0x1b   :  { %466 = vmatpush3.bf16.msra.mxu1 %v504_v11 }
  0x1c   :  { %467 = vmatprep.subr.bf16.mxu1 %v535_v2  ;;  %p519_p4 = pnand %p518_p3, %p512_p0 }
  0x1d   :  { %482 = vmatpush3.bf16.msra.mxu0 %v510_v25 }
  0x1e   :  { %487 = vmatprep.subr.mxu0 %v535_v2 }
  0x1f   :  { %468 = vmatpush3.bf16.msra.mxu1 %v505_v12 }
  0x20   :  { %469 = vmatprep.subr.bf16.mxu1 %v535_v2 }
  0x23   :  { %470 = vmatpush3.bf16.msra.mxu1 %v506_v13 }
  0x93   :  { %v309_v47 = vpop.permute.xlu0 %308 }
  0x94   :  { %v314_v48 = vrot.slane %v309_v47, %v313_v46 }
  0xdf   :  { %v99_v17 = vpop.f32.mrb[0].mxu0 }
  0xe0   :  { %v100_v18 = vadd.f32 %v407_v16, %v99_v17  ;;  %v453_v19 = vpop.f32.mrb[1].mxu0 }
  0xe1   :  { %v102_v20 = vpop.f32.mrb[2].mxu0 }
  0xe2   :  { %v105_v21 = vmax.f32 %v100_v18, 0.0  ;;  %v454_v22 = vpop.f32.mrb[3].mxu0 }
  0xe4   :  { %v106_v23 = vpack.c.bf16 %v105_v21, %v105_v21 }
  0xe6   :  { %472 = vmatmul.mubr.bf16.vlgmr.msra.gmra.mrb[0].mxu1 %v106_v23 }
 0x1b9   :  { %v212_v27 = vpop.f32.mrb[0].mxu1 }
 0x1ba   :  { %v213_v28 = vadd.f32 %v411_v26, %v212_v27  ;;  %v473_v29 = vpop.f32.mrb[1].mxu1 }
 0x1bb   :  { %v215_v30 = vpop.f32.mrb[2].mxu1 }
 0x1bc   :  { %v218_v31 = vmax.f32 %v213_v28, 0.0  ;;  %v474_v32 = vpop.f32.mrb[3].mxu1 }
 0x1be   :  { %v219_v33 = vpack.c.bf16 %v218_v31, %v218_v31 }
 0x1c0   :  { %484 = vmatmul.mubr.msk.bf16.vlgmr.msra.gmra.mrb[4].mxu0 %vm259_vm2, %v219_v33 }
 0x1c1   :  { %489 = vmatprep.mubr.msk.f32.mxu0 %vm536_vm0, %v535_v2 }
 0x293   :  { %v297_v37 = vpop.f32.mrb[4].mxu0 }
 0x294   :  { %v298_v38 = vadd.f32 %v420_v36, %v297_v37  ;;  %v485_v39 = vpop.f32.mrb[5].mxu0 }
 0x295   :  { %v300_v40 = vpop.f32.mrb[6].mxu0 }
 0x296   :  { %v303_v41 = vmax.f32 %v298_v38, 0.0  ;;  %v486_v42 = vpop.f32.mrb[7].mxu0 }
 0x298   :  { %488 = vmatpush3.xpose.msk.msra.mxu0 %vm61_vm1, %v303_v41 }
 0x29b   :  { %490 = vmatmul.mubr.msk.f32.vlgmr.msra.gmra.mrb[8].mxu0 %vm61_vm1, %v304_v43 }
 0x36e   :  { %v387_v49 = vpop.f32.mrb[8].mxu0 }
 0x36f   :  { %v388_v50 = vadd.f32 %v387_v49, %v314_v48  ;;  %v491_v51 = vpop.f32.mrb[9].mxu0 }
 0x371   :  { %392 = vst.msk [vmem:[#allocation3] sm:$0x1] %vm391_vm3, %v388_v50 }
 0x372   :  { %522 = shalt.err (!%p519_p4)
}
 0x373   :  { %s523_s22 = scalar_lea.hbm %s696_s9, 16 }
 0x374   :  { %p524_p5 = scmp.ne.s32.totalorder %s696_s9, %s523_s22  ;;  %p527_p6 = scmp.lt.u32.totalorder %s523_s22, %s696_s9 }
 0x376   :  { %p529_p7 = pnand %p527_p6, %p524_p5 }
 0x378   :  { %532 = shalt.err (!%p529_p7)
}
 0x379   :  { %402 = dma.vmem_to_hbm [thread:$0]  %s400_s0, 16, %s696_s9, [#allocation4]  }
 0x37a   :  { %533 = dma.done.wait [#allocation4], 16  }
 0x37b   :  { %534 = vsyncadd [#allocation4], 4294967280 }
 0x37c   :  { %406 = vsyncpa [#allocation4], 1 }

</bundles_post_ra>
